<compile_context>
chip_gen: v7x
topology: tpu7x:2x2x1
jax: 0.10.0
libtpu: 0.0.40
codegen_flags: <defaults>
</compile_context>

<pallas_src>
import functools
import math

import jax
import jax.numpy as jnp
from jax import lax
from jax.experimental import pallas as pl
from jax.experimental.pallas import tpu as pltpu


def _phuber_ce_kernel(x_ref, lab_ref, out_ref, *, tau, prob_thresh,
                      boundary_term, label_smoothing):
    x = x_ref[...].astype(jnp.float32)                 # (TN, C) logits
    lab = lab_ref[...]                                 # (TN, 1) int32 labels
    tn, c = x.shape

    # One-hot selection via lane-iota compare (no dense (N, C) target in HBM).
    col = lax.broadcasted_iota(jnp.int32, (tn, c), 1)
    sel = col == lab                                   # (TN, C) bool

    # Fused row-wise softmax: only the selected probability gets normalized.
    m = jnp.max(x, axis=1, keepdims=True)              # XLU cross-lane reduce
    e = jnp.exp(x - m)                                 # EUP
    den = jnp.sum(e, axis=1, keepdims=True)            # (TN, 1)
    num = jnp.sum(jnp.where(sel, e, 0.0), axis=1, keepdims=True)
    sm_label = num * pl.reciprocal(den, approx=True)   # (TN, 1) = p(label)

    if label_smoothing > 0.0:
        # sum(softmax * smoothed_onehot) with smoothed values
        #   (1 - ls) on the label, ls/(C-1) elsewhere; uses sum(softmax) == 1.
        p = ((1.0 - label_smoothing) * sm_label
             + (label_smoothing / (c - 1)) * (1.0 - sm_label))
    else:
        p = sm_label

    # Piecewise PHuber loss; guard p in the (possibly discarded) log branch.
    p_safe = jnp.maximum(p, jnp.float32(1e-30))
    loss_lin = -tau * p + boundary_term
    loss_log = -jnp.log(p_safe)
    out_ref[...] = jnp.where(p <= prob_thresh, loss_lin, loss_log)


def _round_up(x, m):
    return ((x + m - 1) // m) * m


def _choose_tile_rows(n, c, itemsize):
    # Aim for ~2 MiB of logits per tile (measured: >=85% of HBM roofline)
    # while keeping double-buffered VMEM use small on every TPU generation.
    target_bytes = 2 << 20
    tn = target_bytes // max(1, c * itemsize)
    tn = max(8, min(1024, (tn // 8) * 8))
    return min(tn, _round_up(n, 8))


def phuber_cross_entropy(logits, labels, tau=10.0, label_smoothing=0.0):
    """logits: (N, C) float; labels: (N,) int in [0, C). Returns (N,) f32."""
    assert 0.0 <= label_smoothing < 1.0
    n, c = logits.shape
    prob_thresh = 1.0 / tau
    boundary_term = math.log(tau) + 1.0

    itemsize = jnp.dtype(logits.dtype).itemsize
    tn = _choose_tile_rows(n, c, itemsize)
    n_pad = _round_up(n, tn)
    if n_pad != n:
        logits = jnp.pad(logits, ((0, n_pad - n), (0, 0)))
        labels = jnp.pad(labels, ((0, n_pad - n),))
    labels2d = labels.astype(jnp.int32).reshape(n_pad, 1)

    kernel = functools.partial(
        _phuber_ce_kernel,
        tau=float(tau),
        prob_thresh=prob_thresh,
        boundary_term=boundary_term,
        label_smoothing=float(label_smoothing),
    )

    cost = pl.CostEstimate(
        flops=int(6 * n_pad * c),
        transcendentals=int(n_pad * c + n_pad),
        bytes_accessed=int(n_pad * c * itemsize + n_pad * 4 + n_pad * 4),
    )

    out = pl.pallas_call(
        kernel,
        out_shape=jax.ShapeDtypeStruct((n_pad, 1), jnp.float32),
        grid=(n_pad // tn,),
        in_specs=[
            pl.BlockSpec((tn, c), lambda i: (i, 0)),
            pl.BlockSpec((tn, 1), lambda i: (i, 0)),
        ],
        out_specs=pl.BlockSpec((tn, 1), lambda i: (i, 0)),
        compiler_params=pltpu.CompilerParams(
            dimension_semantics=("parallel",)),
        cost_estimate=cost,
    )(logits, labels2d)
    return out[:n, 0]


def _reference(logits, labels, tau=10.0, label_smoothing=0.0):
    n, c = logits.shape
    oh = jax.nn.one_hot(labels, c, dtype=jnp.float32)
    smoothed = jnp.full((n, c), label_smoothing / (c - 1), jnp.float32)
    smoothed = jnp.where(oh > 0.5, 1.0 - label_smoothing, smoothed)
    sm = jax.nn.softmax(logits.astype(jnp.float32), axis=1)
    p = jnp.sum(sm * smoothed, axis=1)
    return jnp.where(p <= 1.0 / tau,
                     -tau * p + math.log(tau) + 1.0,
                     -jnp.log(p))


if __name__ == "__main__":
    key = jax.random.PRNGKey(0)

    # Case 1: minibatch=8, C=32, no label smoothing.
    k1, k2, k3, k4 = jax.random.split(key, 4)
    N, C = 8, 32
    logits = jax.random.normal(k1, (N, C), dtype=jnp.float32) * 3.0
    labels = jax.random.randint(k2, (N,), 0, C)

    loss = phuber_cross_entropy(logits, labels, tau=10.0)
    loss = jax.block_until_ready(loss)
    ref = _reference(logits, labels, tau=10.0)
    assert loss.shape == (N,)
    assert jnp.allclose(loss, ref, atol=1e-3, rtol=1e-3), (loss, ref)

    # Case 2: non-multiple-of-8 batch + label smoothing (exercises padding).
    N2, C2 = 13, 40
    logits2 = jax.random.normal(k3, (N2, C2), dtype=jnp.float32) * 3.0
    labels2 = jax.random.randint(k4, (N2,), 0, C2)

    loss2 = phuber_cross_entropy(logits2, labels2, tau=10.0,
                                 label_smoothing=0.1)
    loss2 = jax.block_until_ready(loss2)
    ref2 = _reference(logits2, labels2, tau=10.0, label_smoothing=0.1)
    assert loss2.shape == (N2,)
    assert jnp.allclose(loss2, ref2, atol=1e-3, rtol=1e-3), (loss2, ref2)

    print("KERNEL_OK")
</pallas_src>

<mosaic_0001>
module attributes {stable_mosaic.version = 11 : i64} {
  func.func @_phuber_ce_kernel(%arg0: i32, %arg1: memref<8x32xf32, #tpu.memory_space<vmem>>, %arg2: memref<8x1xi32, #tpu.memory_space<vmem>>, %arg3: memref<8x1xf32, #tpu.memory_space<vmem>>) attributes {dimension_semantics = [#tpu.dimension_semantics<parallel>], iteration_bounds = array<i64: 1>, scalar_prefetch = 0 : i64, scratch_operands = 0 : i64, tpu.core_type = #tpu.core_type<tc>, window_params = [{transform_indices = @transform_0, window_bounds = array<i64: 8, 32>}, {transform_indices = @transform_1, window_bounds = array<i64: 8, 1>}, {transform_indices = @transform_2, window_bounds = array<i64: 8, 1>}]} {
    %c0 = arith.constant 0 : index
    %c0_0 = arith.constant 0 : index
    %0 = vector.load %arg1[%c0, %c0_0] : memref<8x32xf32, #tpu.memory_space<vmem>>, vector<8x32xf32>
    %c0_1 = arith.constant 0 : index
    %c0_2 = arith.constant 0 : index
    %1 = vector.load %arg2[%c0_1, %c0_2] : memref<8x1xi32, #tpu.memory_space<vmem>>, vector<8x1xi32>
    %2 = tpu.iota {dimensions = array<i32: 1>} : vector<8x32xi32>
    %3 = vector.broadcast %1 : vector<8x1xi32> to vector<8x32xi32>
    %4 = arith.cmpi eq, %2, %3 : vector<8x32xi32>
    %cst = arith.constant dense<0xFF800000> : vector<8xf32>
    %5 = vector.multi_reduction <maximumf>, %0, %cst [1] : vector<8x32xf32> to vector<8xf32>
    %6 = vector.shape_cast %5 : vector<8xf32> to vector<8x1xf32>
    %7 = vector.broadcast %6 : vector<8x1xf32> to vector<8x32xf32>
    %8 = arith.subf %0, %7 : vector<8x32xf32>
    %9 = math.exp %8 : vector<8x32xf32>
    %cst_3 = arith.constant dense<0.000000e+00> : vector<8xf32>
    %10 = vector.multi_reduction <add>, %9, %cst_3 [1] : vector<8x32xf32> to vector<8xf32>
    %11 = vector.shape_cast %10 : vector<8xf32> to vector<8x1xf32>
    %cst_4 = arith.constant 0.000000e+00 : f32
    %12 = vector.broadcast %cst_4 : f32 to vector<8x32xf32>
    %13 = arith.select %4, %9, %12 : vector<8x32xi1>, vector<8x32xf32>
    %cst_5 = arith.constant dense<0.000000e+00> : vector<8xf32>
    %14 = vector.multi_reduction <add>, %13, %cst_5 [1] : vector<8x32xf32> to vector<8xf32>
    %15 = vector.shape_cast %14 : vector<8xf32> to vector<8x1xf32>
    %16 = tpu.reciprocal %11 {approx = true} : vector<8x1xf32> -> vector<8x1xf32>
    %17 = arith.mulf %15, %16 : vector<8x1xf32>
    %cst_6 = arith.constant 1.000000e-30 : f32
    %18 = vector.broadcast %cst_6 : f32 to vector<8x1xf32>
    %19 = arith.maximumf %17, %18 : vector<8x1xf32>
    %cst_7 = arith.constant -1.000000e+01 : f32
    %20 = vector.broadcast %cst_7 : f32 to vector<8x1xf32>
    %21 = arith.mulf %20, %17 : vector<8x1xf32>
    %cst_8 = arith.constant 3.30258512 : f32
    %22 = vector.broadcast %cst_8 : f32 to vector<8x1xf32>
    %23 = arith.addf %21, %22 : vector<8x1xf32>
    %24 = math.log %19 : vector<8x1xf32>
    %cst_9 = arith.constant 0.000000e+00 : f32
    %25 = vector.broadcast %cst_9 : f32 to vector<8x1xf32>
    %26 = arith.subf %25, %24 : vector<8x1xf32>
    %cst_10 = arith.constant 1.000000e-01 : f32
    %27 = vector.broadcast %cst_10 : f32 to vector<8x1xf32>
    %28 = arith.cmpf ole, %17, %27 : vector<8x1xf32>
    %29 = arith.select %28, %23, %26 : vector<8x1xi1>, vector<8x1xf32>
    %c0_11 = arith.constant 0 : index
    %c0_12 = arith.constant 0 : index
    %30 = vector.load %arg3[%c0_11, %c0_12] : memref<8x1xf32, #tpu.memory_space<vmem>>, vector<8x1xf32>
    tpu.vector_store %arg3[%c0_11, %c0_12], %29 {strides = array<i32>} : memref<8x1xf32, #tpu.memory_space<vmem>>, vector<8x1xf32>,
    return
  }
  func.func @transform_0(%arg0: i32) -> (i32, i32) {
    %c0_i32 = arith.constant 0 : i32
    %c0_i32_0 = arith.constant 0 : i32
    return %arg0, %c0_i32 : i32, i32
  }
  func.func @transform_1(%arg0: i32) -> (i32, i32) {
    %c0_i32 = arith.constant 0 : i32
    %c0_i32_0 = arith.constant 0 : i32
    return %arg0, %c0_i32 : i32, i32
  }
  func.func @transform_2(%arg0: i32) -> (i32, i32) {
    %c0_i32 = arith.constant 0 : i32
    %c0_i32_0 = arith.constant 0 : i32
    return %arg0, %c0_i32 : i32, i32
  }
}

</mosaic_0001>

<bundles_post_ra>
// kernel: tpu_custom_call.1
= control target key start
LH: loop header
LB: loop body
LE: loop exit
PB: predicated region body
PF: predicated region fallthrough
CT: control target
= control target key end

     0   :  { %vm19_vm0 = vcmask 261120   ;;  %v57_v1 = vmov 0   ;;  %v13_v7 = vlaneseq  ;;  %vm43_vm2 = vcmask 7168   ;;  %s85_s0 = inlined_call_operand.vmem [shape: f32[8,32], index: 0, kind: input, shape index: {}]   ;;  %s86_s1 = inlined_call_operand.vmem [shape: s32[8,1], index: 1, kind: input, shape index: {}]   ;;  %s87_s2 = inlined_call_operand.vmem [shape: f32[8,1], index: 2, kind: output, shape index: {}]  }
   0x1   :  { %v11_v0 = vld [vmem:[%s85_s0] sm:$0xff]  ;;  %50 = vset.pattern.permute.xlu0 %v57_v1 }
   0x2   :  { %v20_v2 = vsel %vm19_vm0, %v11_v0, -inf  ;;  %v12_v3 = vld [vmem:[%s86_s1] sm:$0xff]  ;;  %v14_v8 = vand.u32 127, %v13_v7 }
   0x3   :  { %21 = vmax.xlane.f32.xlu0 %v20_v2 }
  0x19   :  { %16 = vperm.xlu0 %50, %v12_v3  }
  0x90   :  { %v22_v4 = vpop.xlane.xlu0 %21 }
  0x91   :  { %v23_v5 = vsub.f32 %v11_v0, %v22_v4 }
  0x93   :  { %v24_v6 = vmul.f32 1.442695, %v23_v5 }
  0x95   :  { %51 = vpow2.f32 %v24_v6 }
  0x98   :  { %v17_v9 = vpop.permute.xlu0 %16 }
  0x99   :  { %vm18_vm1 = vcmp.eq.s32.totalorder %v14_v8, %v17_v9 }
  0x9f   :  { %v52_v10 = vpop.eup %51 }
  0xa0   :  { %v26_v11 = vsel %vm19_vm0, %v52_v10, 0.0  ;;  %v29_v12 = vsel %vm18_vm1, %v52_v10, 0.0 }
  0xa1   :  { %27 = vadd.xlane.f32.xlu1 %v26_v11  ;;  %v30_v13 = vsel %vm19_vm0, %v29_v12, 0.0 }
  0xa5   :  { %31 = vadd.xlane.f32.xlu1 %v30_v13 }
 0x12e   :  { %v28_v14 = vpop.xlane.xlu1 %27 }
 0x12f   :  { %53 = vrcp.f32 %v28_v14 }
 0x132   :  { %v32_v16 = vpop.xlane.xlu1 %31 }
 0x139   :  { %v54_v15 = vpop.eup %53 }
 0x13a   :  { %v34_v17 = vmul.f32 %v54_v15, %v32_v16 }
 0x13c   :  { %v35_v18 = vmax.f32 %v34_v17, 1e-30  ;;  %v36_v19 = vmul.f32 -10.0, %v34_v17  ;;  %vm41_vm3 = vcmp.le.f32.partialorder %v34_v17, 0.1 }
 0x13e   :  { %55 = vlog2.f32 %v35_v18  ;;  %v37_v22 = vadd.f32 3.3025851, %v36_v19 }
 0x148   :  { %v56_v20 = vpop.eup %55 }
 0x149   :  { %v39_v21 = vmul.f32 0.6931472, %v56_v20 }
 0x14b   :  { %v40_v23 = vsub.f32 0.0, %v39_v21 }
 0x14d   :  { %v42_v24 = vsel %vm41_vm3, %v37_v22, %v40_v23 }
 0x14e   :  { %44 = vst.msk [vmem:[%s87_s2] sm:$0xff] %vm43_vm2, %v42_v24 }

</bundles_post_ra>
